<compile_context>
chip_gen: v7x
topology: tpu7x:2x2x1
jax: 0.10.0
libtpu: 0.0.40
codegen_flags: <defaults>
</compile_context>

<pallas_src>
import math

import jax
import jax.numpy as jnp
import numpy as np
from jax.experimental import pallas as pl
from jax.experimental.pallas import tpu as pltpu


# ---------------------------------------------------------------------------
# Kernel body: pure broadcast add.  All PE math is hoisted to the host.
# x_ref: (r_block, unit, W), pe_ref: (1, unit, W), o_ref: (r_block, unit, W).
# ---------------------------------------------------------------------------
def _add_pe_kernel(x_ref, pe_ref, o_ref):
    # Native-dtype add: exact for f32; for bf16 activations the error is
    # negligible and Mosaic upcasts internally on v5e (no bf16 VALU).
    o_ref[...] = (x_ref[...] + pe_ref[...]).astype(o_ref.dtype)


# ---------------------------------------------------------------------------
# Host-side helpers.
# ---------------------------------------------------------------------------
def _pe_table(image_num, d_model):
    """(image_num, d_model) float32 sinusoidal table matching the PyTorch loop."""
    j = np.arange(image_num, dtype=np.float32)[:, None]             # (J, 1)
    col = np.arange(d_model)                                        # (D,)
    exponent = ((col // 2) * 2).astype(np.float32)                  # even c: c, odd c: c-1
    inv_freq = np.exp(exponent * (-math.log(10000.0) / d_model))    # (D,)
    angle = j * inv_freq[None, :]                                   # (J, D)
    pe = np.where(col % 2 == 0, np.sin(angle), np.cos(angle))
    return pe.astype(np.float32)


def _vmem_plan():
    """Return (per_buffer_budget_bytes, vmem_limit_bytes), generation-aware.

    Total pipeline footprint is ~ 2*x_tile + 2*out_tile + pe_tile(tiny), so we
    keep 4 * per_buffer under ~62% of physical VMEM and set the scoped limit
    just above that (v7x has only 64 MiB physical; v5e/v6e have 128 MiB but a
    16/32 MiB scoped default that must be raised explicitly).
    """
    phys = 64 << 20                                   # conservative floor (v7x)
    try:
        phys = int(pltpu.get_tpu_info().vmem_capacity_bytes)
    except Exception:
        pass
    phys = max(32 << 20, min(phys, 128 << 20))
    total_budget = (phys * 5) // 8
    per_buffer = total_budget // 4
    vmem_limit = min(phys - (8 << 20), total_budget + (8 << 20))
    return per_buffer, int(vmem_limit)


def _choose_units_per_block(n_units, unit_bytes, per_buffer_budget):
    """Largest divisor of n_units whose tile fits the per-buffer budget,
    preferring an even grid count (v7x megacore balance), then >=2 steps."""
    divisors = sorted({d for i in range(1, math.isqrt(n_units) + 1)
                       if n_units % i == 0 for d in (i, n_units // i)})
    feasible = [d for d in divisors if d * unit_bytes <= per_buffer_budget] or [1]
    even = [d for d in feasible if (n_units // d) >= 2 and (n_units // d) % 2 == 0]
    multi = [d for d in feasible if (n_units // d) >= 2]
    pool = even or multi or feasible
    return max(pool)


# ---------------------------------------------------------------------------
# Public wrapper: VOPositionEmbs.forward (eval mode).
# ---------------------------------------------------------------------------
def vo_position_embs(x, *, image_num, des_num, des_dim, dropout_rate=0.1,
                     use_xla_fast_path=True):
    B, J, S, D = x.shape
    d_model = des_dim + 2
    assert J == image_num and S == des_num and D == d_model

    # TODO(synk): nn.Dropout is stochastic at train time; forward here uses
    # eval-mode semantics (identity).  self.des_embedding (nn.Linear) is
    # defined by the module but never used in forward, so it is omitted.

    pe_np = _pe_table(image_num, d_model)                            # (J, D) f32

    # Tiny-input fast path: pallas_call fixed overhead dwarfs the transfer at
    # these sizes; XLA fuses the broadcast add for free.
    total_bytes = x.size * x.dtype.itemsize
    if use_xla_fast_path and total_bytes <= (256 << 10):
        pe_b = jnp.asarray(pe_np, dtype=x.dtype)[None, :, None, :]   # (1,J,1,D)
        out = x + pe_b
        return out.reshape(B, image_num * des_num, d_model)

    rows_total = B * image_num
    row_width = des_num * d_model
    itemsize = x.dtype.itemsize

    # Lane-density guard: fold k rows into the lane dim so the trailing block
    # dim W is a multiple of 128 (unmasked full-lane stores).
    k = math.lcm(row_width, 128) // row_width
    W = k * row_width
    # PE period over folded rows, rounded up to a legal sublane multiple of 8.
    period = math.lcm(image_num, k) // k
    unit = math.lcm(period, 8)

    # Pad rows up to a multiple of (k * unit) so the grid tiles cleanly; the
    # padded tail is sliced off afterwards (correct for any batch size).
    pad_to = k * unit
    rows_padded = ((rows_total + pad_to - 1) // pad_to) * pad_to

    x2 = x.reshape(rows_total, row_width)
    if rows_padded != rows_total:
        x2 = jnp.pad(x2, ((0, rows_padded - rows_total), (0, 0)))

    n_units = rows_padded // pad_to
    x3 = x2.reshape(n_units, unit, W)

    # Minimal repeating PE tile (1, unit, W) in x.dtype.  One original row's
    # PE is the per-image table repeated des_num times along the width; the
    # unit folded rows cover unit*k original rows with image index r % J.
    pe_row = np.tile(pe_np[:, None, :], (1, des_num, 1)).reshape(image_num, row_width)
    pe_tile_np = pe_row[np.arange(unit * k) % image_num].reshape(1, unit, W)
    pe_tile = jnp.asarray(pe_tile_np, dtype=x.dtype)

    per_buffer_budget, vmem_limit = _vmem_plan()
    unit_bytes = unit * W * itemsize
    r_block = _choose_units_per_block(n_units, unit_bytes, per_buffer_budget)
    grid = (n_units // r_block,)

    out3 = pl.pallas_call(
        _add_pe_kernel,
        out_shape=jax.ShapeDtypeStruct((n_units, unit, W), x.dtype),
        grid_spec=pltpu.PrefetchScalarGridSpec(
            num_scalar_prefetch=0,
            grid=grid,
            in_specs=[
                pl.BlockSpec((r_block, unit, W), lambda i: (i, 0, 0)),
                pl.BlockSpec((1, unit, W), lambda i: (0, 0, 0)),
            ],
            out_specs=pl.BlockSpec((r_block, unit, W), lambda i: (i, 0, 0)),
        ),
        compiler_params=pltpu.CompilerParams(
            dimension_semantics=("parallel",),
            vmem_limit_bytes=vmem_limit,
        ),
    )(x3, pe_tile)

    out2 = out3.reshape(rows_padded, row_width)
    if rows_padded != rows_total:
        out2 = out2[:rows_total]
    return out2.reshape(B, image_num * des_num, d_model)


# ---------------------------------------------------------------------------
# Pure-numpy replica of the PyTorch forward, for verification.
# ---------------------------------------------------------------------------
def _reference(x, image_num, des_dim):
    x = np.asarray(x, dtype=np.float32)
    B, J, S, D = x.shape
    d_model = des_dim + 2
    pe = np.ones((B, J, S, D), dtype=np.float32)
    for j in range(image_num):
        div_term = np.exp(np.arange(0, d_model, 2).astype(np.float32)
                          * (-math.log(10000.0) / d_model))
        div_term_ = np.exp(np.arange(0, d_model - 1, 2).astype(np.float32)
                           * (-math.log(10000.0) / d_model))
        pe[:, j, :, 0::2] = np.sin(j * div_term)
        pe[:, j, :, 1::2] = np.cos(j * div_term_)
    out = x + pe
    return out.reshape(B, J * S, D)


if __name__ == "__main__":
    key = jax.random.PRNGKey(0)

    # --- Test 1: canonical small shapes, Pallas path forced (lane-dense W). --
    batch, image_num, des_num, des_dim = 2, 4, 8, 30      # d_model = 32, W = 256
    D = des_dim + 2
    k1, k2, k3, k4 = jax.random.split(key, 4)
    x1 = jax.random.normal(k1, (batch, image_num, des_num, D), dtype=jnp.float32)
    out1 = jax.block_until_ready(vo_position_embs(
        x1, image_num=image_num, des_num=des_num, des_dim=des_dim,
        use_xla_fast_path=False))
    np.testing.assert_allclose(np.asarray(out1), _reference(x1, image_num, des_dim),
                               rtol=1e-5, atol=1e-5)

    # --- Test 2: multi-step grid (even grid-count preference). ---------------
    x2 = jax.random.normal(k2, (16, image_num, des_num, D), dtype=jnp.float32)
    out2 = jax.block_until_ready(vo_position_embs(
        x2, image_num=image_num, des_num=des_num, des_dim=des_dim,
        use_xla_fast_path=False))
    np.testing.assert_allclose(np.asarray(out2), _reference(x2, image_num, des_dim),
                               rtol=1e-5, atol=1e-5)

    # --- Test 3: non-128-multiple row width (lane folding) + row padding. ----
    b3, dn3, dd3 = 3, 8, 22                                # d_model = 24, row_width = 192
    x3 = jax.random.normal(k3, (b3, image_num, dn3, dd3 + 2), dtype=jnp.float32)
    out3 = jax.block_until_ready(vo_position_embs(
        x3, image_num=image_num, des_num=dn3, des_dim=dd3,
        use_xla_fast_path=False))
    np.testing.assert_allclose(np.asarray(out3), _reference(x3, image_num, dd3),
                               rtol=1e-5, atol=1e-5)

    # --- Test 4: tiny-input XLA fast path (default behaviour). ---------------
    x4 = jax.random.normal(k4, (batch, image_num, des_num, D), dtype=jnp.float32)
    out4 = jax.block_until_ready(vo_position_embs(
        x4, image_num=image_num, des_num=des_num, des_dim=des_dim))
    np.testing.assert_allclose(np.asarray(out4), _reference(x4, image_num, des_dim),
                               rtol=1e-5, atol=1e-5)

    print("KERNEL_OK")
</pallas_src>

<mosaic_0001>
module attributes {stable_mosaic.version = 11 : i64} {
  func.func @_add_pe_kernel(%arg0: i32, %arg1: memref<1x8x256xf32, #tpu.memory_space<vmem>>, %arg2: memref<1x8x256xf32, #tpu.memory_space<vmem>>, %arg3: memref<1x8x256xf32, #tpu.memory_space<vmem>>) attributes {dimension_semantics = [#tpu.dimension_semantics<parallel>], iteration_bounds = array<i64: 1>, scalar_prefetch = 0 : i64, scratch_operands = 0 : i64, tpu.core_type = #tpu.core_type<tc>, window_params = [{transform_indices = @transform_0, window_bounds = array<i64: 1, 8, 256>}, {pipeline_mode = #tpu.pipeline_mode<synchronous>, transform_indices = @transform_1, window_bounds = array<i64: 1, 8, 256>}, {transform_indices = @transform_2, window_bounds = array<i64: 1, 8, 256>}]} {
    %c0 = arith.constant 0 : index
    %c0_0 = arith.constant 0 : index
    %c0_1 = arith.constant 0 : index
    %0 = vector.load %arg1[%c0, %c0_0, %c0_1] : memref<1x8x256xf32, #tpu.memory_space<vmem>>, vector<1x8x256xf32>
    %c0_2 = arith.constant 0 : index
    %c0_3 = arith.constant 0 : index
    %c0_4 = arith.constant 0 : index
    %1 = vector.load %arg2[%c0_2, %c0_3, %c0_4] : memref<1x8x256xf32, #tpu.memory_space<vmem>>, vector<1x8x256xf32>
    %2 = arith.addf %0, %1 : vector<1x8x256xf32>
    %c0_5 = arith.constant 0 : index
    %c0_6 = arith.constant 0 : index
    %c0_7 = arith.constant 0 : index
    %3 = vector.load %arg3[%c0_5, %c0_6, %c0_7] : memref<1x8x256xf32, #tpu.memory_space<vmem>>, vector<1x8x256xf32>
    tpu.vector_store %arg3[%c0_5, %c0_6, %c0_7], %2 {strides = array<i32>} : memref<1x8x256xf32, #tpu.memory_space<vmem>>, vector<1x8x256xf32>,
    return
  }
  func.func @transform_0(%arg0: i32) -> (i32, i32, i32) {
    %c0_i32 = arith.constant 0 : i32
    %c0_i32_0 = arith.constant 0 : i32
    %c0_i32_1 = arith.constant 0 : i32
    return %arg0, %c0_i32, %c0_i32_0 : i32, i32, i32
  }
  func.func @transform_1(%arg0: i32) -> (i32, i32, i32) {
    %c0_i32 = arith.constant 0 : i32
    %c0_i32_0 = arith.constant 0 : i32
    %c0_i32_1 = arith.constant 0 : i32
    %c0_i32_2 = arith.constant 0 : i32
    return %c0_i32, %c0_i32_0, %c0_i32_1 : i32, i32, i32
  }
  func.func @transform_2(%arg0: i32) -> (i32, i32, i32) {
    %c0_i32 = arith.constant 0 : i32
    %c0_i32_0 = arith.constant 0 : i32
    %c0_i32_1 = arith.constant 0 : i32
    return %arg0, %c0_i32, %c0_i32_0 : i32, i32, i32
  }
}

</mosaic_0001>

<bundles_post_ra>
// kernel: tpu_custom_call.1
= control target key start
LH: loop header
LB: loop body
LE: loop exit
PB: predicated region body
PF: predicated region fallthrough
CT: control target
= control target key end

     0   :  { %7 = vsyncpa [#allocation3], 0  ;;  %s189_s0 = inlined_call_operand.hbm [shape: f32[1,8,256], index: 0, kind: input, shape index: {}]   ;;  %s190_s1 = inlined_call_operand.hbm [shape: f32[1,8,256], index: 1, kind: input, shape index: {}]   ;;  %s191_s2 = inlined_call_operand.hbm [shape: f32[1,8,256], index: 2, kind: output, shape index: {}]  }
   0x1   :  { %8 = vsyncpa [#allocation6], 0 }
   0x2   :  { %9 = vsyncpa [#allocation4], 0  ;;  %s135_s9 = smov [#allocation2]   ;;  %s136_s11 = smov [#allocation5]  }
   0x3   :  { %s16_s10 = sshll.u32 %s135_s9, 4  ;;  %s26_s12 = sshll.u32 %s136_s11, 4  ;;  %s17_s10 = int_to_ptr.vmem [resolvable:$true] %s16_s10  ;;  %s27_s12 = int_to_ptr.vmem [resolvable:$true] %s26_s12 }
   0x4   :  { %s63_s15 = scalar_lea.hbm %s189_s0, 256 }
   0x5   :  { %p64_p0 = scmp.ne.s32.totalorder %s189_s0, %s63_s15  ;;  %p67_p1 = scmp.lt.u32.totalorder %s63_s15, %s189_s0 }
   0x7   :  { %p69_p2 = pnand %p67_p1, %p64_p0 }
   0x9   :  { %72 = shalt.err (!%p69_p2)
}
   0xa   :  { %s73_s20 = scalar_lea.vmem %s17_s10, 256  ;;  %p78_p4 = scmp.lt.s32.totalorder %s17_s10, %s17_s10 }
   0xb   :  { %p74_p3 = scmp.ne.s32.totalorder %s17_s10, %s73_s20  ;;  %p79_p5 = scmp.lt.s32.totalorder %s73_s20, %s73_s20 }
   0xd   :  { %p80_p6 = por %p79_p5, %p78_p4 }
   0xf   :  { %p81_p7 = pnand %p80_p6, %p74_p3 }
  0x11   :  { %84 = shalt.err (!%p81_p7)
}
  0x12   :  { %19 = dma.hbm_to_vmem [thread:$0]  %s189_s0, 256, %s17_s10, [#allocation3]  }
  0x13   :  { %s85_s25 = scalar_lea.hbm %s190_s1, 256 }
  0x14   :  { %p86_p8 = scmp.ne.s32.totalorder %s190_s1, %s85_s25  ;;  %p89_p9 = scmp.lt.u32.totalorder %s85_s25, %s190_s1 }
  0x16   :  { %p91_p10 = pnand %p89_p9, %p86_p8 }
  0x18   :  { %94 = shalt.err (!%p91_p10)
}
  0x19   :  { %s95_s30 = scalar_lea.vmem %s27_s12, 256  ;;  %p100_p12 = scmp.lt.s32.totalorder %s27_s12, %s27_s12 }
  0x1a   :  { %p96_p11 = scmp.ne.s32.totalorder %s27_s12, %s95_s30  ;;  %p101_p13 = scmp.lt.s32.totalorder %s95_s30, %s95_s30 }
  0x1c   :  { %p102_p0 = por %p101_p13, %p100_p12 }
  0x1e   :  { %p103_p1 = pnand %p102_p0, %p96_p11 }
  0x20   :  { %106 = shalt.err (!%p103_p1)
}
  0x21   :  { %29 = dma.hbm_to_vmem [thread:$0]  %s190_s1, 256, %s27_s12, [#allocation6]  }
  0x22   :  { %129 = dma.done.wait [#allocation3], 256  }
  0x23   :  { %130 = vsyncadd [#allocation3], 4294967040 }
  0x24   :  { %131 = dma.done.wait [#allocation6], 256  }
  0x25   :  { %132 = vsyncadd [#allocation6], 4294967040  ;;  %s137_s4 = smov [#allocation7]   ;;  %v36_v0 = vld [vmem:[#allocation2] sm:$0xff]  ;;  %v38_v1 = vld [vmem:[#allocation5] sm:$0xff] }
  0x26   :  { %s50_s5 = sshll.u32 %s137_s4, 4  ;;  %v37_v2 = vld [vmem:[#allocation2 + $0x8] sm:$0xff]  ;;  %v40_v3 = vadd.f32 %v38_v1, %v36_v0  ;;  %v39_v4 = vld [vmem:[#allocation5 + $0x8] sm:$0xff]  ;;  %s51_s5 = int_to_ptr.vmem [resolvable:$true] %s50_s5 }
  0x27   :  { %v41_v5 = vadd.f32 %v39_v4, %v37_v2  ;;  %s107_s6 = scalar_lea.vmem %s51_s5, 256  ;;  %p112_p3 = scmp.lt.s32.totalorder %s51_s5, %s51_s5 }
  0x28   :  { %42 = vst [vmem:[#allocation7] sm:$0xff] %v40_v3  ;;  %p108_p2 = scmp.ne.s32.totalorder %s51_s5, %s107_s6  ;;  %p113_p4 = scmp.lt.s32.totalorder %s107_s6, %s107_s6 }
  0x29   :  { %43 = vst [vmem:[#allocation7 + $0x8] sm:$0xff] %v41_v5 }
  0x2a   :  { %p114_p5 = por %p113_p4, %p112_p3 }
  0x2c   :  { %p115_p6 = pnand %p114_p5, %p108_p2 }
  0x2e   :  { %118 = shalt.err (!%p115_p6)
}
  0x2f   :  { %s119_s8 = scalar_lea.hbm %s191_s2, 256 }
  0x30   :  { %p120_p7 = scmp.ne.s32.totalorder %s191_s2, %s119_s8  ;;  %p123_p8 = scmp.lt.u32.totalorder %s119_s8, %s191_s2 }
  0x32   :  { %p125_p9 = pnand %p123_p8, %p120_p7 }
  0x34   :  { %128 = shalt.err (!%p125_p9)
}
  0x35   :  { %53 = dma.vmem_to_hbm [thread:$0]  %s51_s5, 256, %s191_s2, [#allocation4]  }
  0x36   :  { %133 = dma.done.wait [#allocation4], 256  }
  0x37   :  { %134 = vsyncadd [#allocation4], 4294967040 }
  0x38   :  { %57 = vsyncpa [#allocation3], 1 }
  0x39   :  { %58 = vsyncpa [#allocation6], 1 }
  0x3a   :  { %59 = vsyncpa [#allocation4], 1 }

</bundles_post_ra>
